<compile_context>
chip_gen: v7x
topology: tpu7x:2x2x1
jax: 0.10.0
libtpu: 0.0.40
codegen_flags: <defaults>
</compile_context>

<pallas_src>
import functools

import jax
import jax.numpy as jnp
from jax.experimental import pallas as pl
from jax.experimental.pallas import tpu as pltpu

DEFAULT_MATMUL_DTYPE = jnp.bfloat16  # MXU-native on v5e/v6e/v7x; math stays f32.


def _round_up(v, m):
    return ((v + m - 1) // m) * m


@functools.lru_cache(maxsize=1)
def _vmem_capacity_bytes():
    try:
        cap = int(pltpu.get_tpu_info().vmem_capacity_bytes)
        if cap > 0:
            return cap
    except Exception:
        pass
    return 64 * 1024 * 1024  # conservative fallback: v7x has 64 MiB per TensorCore


def _apply_act(x, act_fun):
    if act_fun == "relu":
        return jnp.maximum(x, 0.0)
    if act_fun == "sigmoid":
        return jax.nn.sigmoid(x)
    if act_fun == "tanh":
        return jnp.tanh(x)
    raise ValueError(f"unknown act_fun: {act_fun}")


# --------------------------------- kernels --------------------------------- #
def _ffw_no_hidden_kernel(x_ref, w_in_ref, b_in_ref, w_out_ref, b_out_ref, o_ref,
                          *, act_fun, matmul_dtype):
    h = jnp.dot(x_ref[...].astype(matmul_dtype), w_in_ref[...],
                preferred_element_type=jnp.float32)
    h = _apply_act(h + b_in_ref[...].astype(jnp.float32), act_fun)
    out = jnp.dot(h.astype(matmul_dtype), w_out_ref[...],
                  preferred_element_type=jnp.float32)
    o_ref[...] = (out + b_out_ref[...].astype(jnp.float32)).astype(o_ref.dtype)


def _ffw_resident_kernel(x_ref, w_in_ref, b_in_ref, w_h_ref, b_h_ref,
                         w_out_ref, b_out_ref, o_ref,
                         *, act_fun, n_hidd_layers, matmul_dtype):
    # All weights resident in VMEM; small static layer count -> unrolled loop.
    h = jnp.dot(x_ref[...].astype(matmul_dtype), w_in_ref[...],
                preferred_element_type=jnp.float32)
    h = _apply_act(h + b_in_ref[...].astype(jnp.float32), act_fun)
    for l in range(n_hidd_layers):
        h = jnp.dot(h.astype(matmul_dtype), w_h_ref[l],
                    preferred_element_type=jnp.float32)
        h = _apply_act(h + b_h_ref[l].astype(jnp.float32), act_fun)
    out = jnp.dot(h.astype(matmul_dtype), w_out_ref[...],
                  preferred_element_type=jnp.float32)
    o_ref[...] = (out + b_out_ref[...].astype(jnp.float32)).astype(o_ref.dtype)


def _ffw_streamed_kernel(x_ref, w_in_ref, b_in_ref, w_h_ref, b_h_ref,
                         w_out_ref, b_out_ref, o_ref, h_ref,
                         *, act_fun, matmul_dtype):
    # Grid = (batch tiles, n_hidd_layers).  One (H, H) hidden layer is DMA'd per
    # step (double-buffered by the pipeline), the activation lives in a VMEM
    # scratch across layer steps.  x / w_in / w_out blocks are grid-invariant
    # along the layer axis, so they are not re-fetched per layer.
    layer = pl.program_id(1)

    @pl.when(layer == 0)
    def _():
        h0 = jnp.dot(x_ref[...].astype(matmul_dtype), w_in_ref[...],
                     preferred_element_type=jnp.float32)
        h_ref[...] = _apply_act(h0 + b_in_ref[...].astype(jnp.float32), act_fun)

    h = jnp.dot(h_ref[...].astype(matmul_dtype), w_h_ref[0],
                preferred_element_type=jnp.float32)
    h = _apply_act(h + b_h_ref[0].astype(jnp.float32), act_fun)
    h_ref[...] = h

    @pl.when(layer == pl.num_programs(1) - 1)
    def _():
        out = jnp.dot(h.astype(matmul_dtype), w_out_ref[...],
                      preferred_element_type=jnp.float32)
        o_ref[...] = (out + b_out_ref[...].astype(jnp.float32)).astype(o_ref.dtype)


# ------------------------------ host wrappers ------------------------------ #
def prepare_params(params, matmul_dtype=None):
    """One-time padding + dtype cast of ffwReg parameters (hoisted off hot path).

    params: dict with w_in [n_inp,H], b_in [H], w_h [L,H,H], b_h [L,H],
            w_out [H,n_out], b_out [n_out]   (weights are PyTorch weight.T).
    """
    if matmul_dtype is None:
        matmul_dtype = DEFAULT_MATMUL_DTYPE
    md = jnp.dtype(matmul_dtype)

    w_in, b_in = params["w_in"], params["b_in"]
    w_out, b_out = params["w_out"], params["b_out"]
    w_h, b_h = params.get("w_h"), params.get("b_h")

    n_inp, n_hidd = int(w_in.shape[0]), int(w_in.shape[1])
    n_out = int(w_out.shape[1])
    L = 0 if w_h is None else int(w_h.shape[0])

    # Input features: pad only to a multiple of 8 (block uses full extent -> no
    # 128-lane inflation of x traffic).  Hidden/output features: pad to 128 for
    # aligned MXU tiles and a lane-dense output store.  Zero padding is exact.
    K8 = _round_up(max(n_inp, 1), 8)
    H = max(128, _round_up(n_hidd, 128))
    N = n_out if n_out % 128 == 0 else max(128, _round_up(n_out, 128))

    prep = {
        "w_in": jnp.pad(w_in, ((0, K8 - n_inp), (0, H - n_hidd))).astype(md),
        "b_in": jnp.pad(b_in, ((0, H - n_hidd),)).reshape(1, H).astype(jnp.float32),
        "w_out": jnp.pad(w_out, ((0, H - n_hidd), (0, N - n_out))).astype(md),
        "b_out": jnp.pad(b_out, ((0, N - n_out),)).reshape(1, N).astype(jnp.float32),
        "w_h": None, "b_h": None,
        "n_inp": n_inp, "n_hidd": n_hidd, "n_out": n_out,
        "L": L, "K8": K8, "H": H, "N": N, "matmul_dtype": md,
    }
    if L > 0:
        prep["w_h"] = jnp.pad(
            w_h, ((0, 0), (0, H - n_hidd), (0, H - n_hidd))).astype(md)
        prep["b_h"] = jnp.pad(
            b_h, ((0, 0), (0, H - n_hidd))).reshape(L, 1, H).astype(jnp.float32)
    return prep


def ffw_reg_forward(x, prep, *, act_fun="relu", tile_b=256, weight_streaming=None):
    """Fused MLP forward (eval mode / dropout=False) as a single Pallas kernel.

    x:    [B, n_inp]
    prep: output of prepare_params() (pre-padded, pre-cast weights).
    weight_streaming: None = auto (stream hidden-layer weights when the resident
      stack would use too much VMEM); True/False to force.
    """
    B, n_inp = x.shape
    assert n_inp == prep["n_inp"], (n_inp, prep["n_inp"])
    K8, H, N, L = prep["K8"], prep["H"], prep["N"], prep["L"]
    n_out = prep["n_out"]
    md = prep["matmul_dtype"]
    wsz = md.itemsize
    osz = x.dtype.itemsize

    w_in_p, b_in_p = prep["w_in"], prep["b_in"]
    w_out_p, b_out_p = prep["w_out"], prep["b_out"]
    w_h_p, b_h_p = prep["w_h"], prep["b_h"]

    # ---- Batch tiling: large aligned tiles; guarantee >= 2 grid steps when the
    # batch allows it so "parallel" can shard across v7x's two TensorCores. ----
    tile_b_eff = max(8, min(_round_up(tile_b, 8), _round_up(B, 8)))
    if -(-B // tile_b_eff) == 1 and B >= 16:
        tile_b_eff = _round_up(-(-B // 2), 8)

    # ---- VMEM budget: honest sum, clamped to ~85% of physical per-core VMEM. --
    cap = _vmem_capacity_bytes()
    budget = int(0.85 * cap)
    w_small = (w_in_p.size + w_out_p.size) * wsz + (b_in_p.size + b_out_p.size) * 4
    w_hid = 0 if L == 0 else (w_h_p.size * wsz + b_h_p.size * 4)

    if weight_streaming is None:
        streamed = L > 0 and (L > 16 or (w_small + w_hid) > 0.35 * cap)
    else:
        streamed = bool(weight_streaming) and L > 0

    def _need(tb):
        io = 2 * tb * K8 * osz + 2 * tb * N * osz            # double-buffered x/out
        act = (3 * tb * max(H, N) + tb * H) * 4              # live f32 intermediates
        if streamed:
            return io + w_small + 2 * (H * H * wsz + H * 4) + act
        return io + w_small + w_hid + act

    while _need(tile_b_eff) + (4 << 20) > budget and tile_b_eff > 8:
        tile_b_eff = max(8, _round_up(tile_b_eff // 2, 8))

    n_tiles = -(-B // tile_b_eff)
    B_pad = n_tiles * tile_b_eff
    vmem_limit = int(min(budget, max(_need(tile_b_eff) + (4 << 20), 16 << 20)))

    # Pad rows to the tile and features to K8 (multiple of 8) only when needed.
    if B_pad != B or K8 != n_inp:
        xp = jnp.pad(x, ((0, B_pad - B), (0, K8 - n_inp)))
    else:
        xp = x

    const1 = pl.Buffered(1)  # grid-invariant operands: keep a single VMEM copy

    if L == 0:
        kernel = functools.partial(_ffw_no_hidden_kernel,
                                   act_fun=act_fun, matmul_dtype=md)
        grid = (n_tiles,)
        in_specs = [
            pl.BlockSpec((tile_b_eff, K8), lambda i: (i, 0)),
            pl.BlockSpec((K8, H), lambda i: (0, 0), pipeline_mode=const1),
            pl.BlockSpec((1, H), lambda i: (0, 0), pipeline_mode=const1),
            pl.BlockSpec((H, N), lambda i: (0, 0), pipeline_mode=const1),
            pl.BlockSpec((1, N), lambda i: (0, 0), pipeline_mode=const1),
        ]
        out_spec = pl.BlockSpec((tile_b_eff, N), lambda i: (i, 0))
        operands = (xp, w_in_p, b_in_p, w_out_p, b_out_p)
        scratch = ()
        dims = ("parallel",)
    elif not streamed:
        kernel = functools.partial(_ffw_resident_kernel, act_fun=act_fun,
                                   n_hidd_layers=L, matmul_dtype=md)
        grid = (n_tiles,)
        in_specs = [
            pl.BlockSpec((tile_b_eff, K8), lambda i: (i, 0)),
            pl.BlockSpec((K8, H), lambda i: (0, 0), pipeline_mode=const1),
            pl.BlockSpec((1, H), lambda i: (0, 0), pipeline_mode=const1),
            pl.BlockSpec((L, H, H), lambda i: (0, 0, 0), pipeline_mode=const1),
            pl.BlockSpec((L, 1, H), lambda i: (0, 0, 0), pipeline_mode=const1),
            pl.BlockSpec((H, N), lambda i: (0, 0), pipeline_mode=const1),
            pl.BlockSpec((1, N), lambda i: (0, 0), pipeline_mode=const1),
        ]
        out_spec = pl.BlockSpec((tile_b_eff, N), lambda i: (i, 0))
        operands = (xp, w_in_p, b_in_p, w_h_p, b_h_p, w_out_p, b_out_p)
        scratch = ()
        dims = ("parallel",)
    else:
        kernel = functools.partial(_ffw_streamed_kernel,
                                   act_fun=act_fun, matmul_dtype=md)
        grid = (n_tiles, L)
        in_specs = [
            pl.BlockSpec((tile_b_eff, K8), lambda i, l: (i, 0)),
            pl.BlockSpec((K8, H), lambda i, l: (0, 0), pipeline_mode=const1),
            pl.BlockSpec((1, H), lambda i, l: (0, 0), pipeline_mode=const1),
            pl.BlockSpec((1, H, H), lambda i, l: (l, 0, 0)),   # streamed layer
            pl.BlockSpec((1, 1, H), lambda i, l: (l, 0, 0)),
            pl.BlockSpec((H, N), lambda i, l: (0, 0), pipeline_mode=const1),
            pl.BlockSpec((1, N), lambda i, l: (0, 0), pipeline_mode=const1),
        ]
        out_spec = pl.BlockSpec((tile_b_eff, N), lambda i, l: (i, 0))
        operands = (xp, w_in_p, b_in_p, w_h_p, b_h_p, w_out_p, b_out_p)
        scratch = (pltpu.VMEM((tile_b_eff, H), jnp.float32),)
        dims = ("parallel", "arbitrary")

    out = pl.pallas_call(
        kernel,
        out_shape=jax.ShapeDtypeStruct((B_pad, N), x.dtype),
        grid_spec=pltpu.PrefetchScalarGridSpec(
            num_scalar_prefetch=0,
            grid=grid,
            in_specs=in_specs,
            out_specs=out_spec,
            scratch_shapes=scratch,
        ),
        compiler_params=pltpu.CompilerParams(
            dimension_semantics=dims,
            vmem_limit_bytes=vmem_limit,
        ),
    )(*operands)

    if B_pad != B or N != n_out:
        out = out[:B, :n_out]
    return out


# --------------------------- reference / test utils ------------------------ #
def init_params(key, n_inp, n_out, n_hidd, n_hidd_layers, dtype=jnp.float32):
    """Deterministic synthetic parameters (same shapes as the PyTorch module)."""
    ks = jax.random.split(key, 6)
    scale_in = 1.0 / jnp.sqrt(n_inp)
    scale_h = 1.0 / jnp.sqrt(n_hidd)
    return {
        # stored as [in, out] == PyTorch weight.T
        "w_in": jax.random.uniform(ks[0], (n_inp, n_hidd), dtype, -scale_in, scale_in),
        "b_in": jax.random.uniform(ks[1], (n_hidd,), dtype, -scale_in, scale_in),
        "w_h": jax.random.uniform(ks[2], (n_hidd_layers, n_hidd, n_hidd), dtype,
                                  -scale_h, scale_h),
        "b_h": jax.random.uniform(ks[3], (n_hidd_layers, n_hidd), dtype,
                                  -scale_h, scale_h),
        "w_out": jax.random.uniform(ks[4], (n_hidd, n_out), dtype, -scale_h, scale_h),
        "b_out": jax.random.uniform(ks[5], (n_out,), dtype, -scale_h, scale_h),
    }


def ffw_reg_reference(x, params, act_fun="relu"):
    """Plain-JAX reference matching the PyTorch forward (dropout=False)."""
    act = {"relu": lambda v: jnp.maximum(v, 0.0),
           "sigmoid": jax.nn.sigmoid,
           "tanh": jnp.tanh}[act_fun]
    h = act(x @ params["w_in"] + params["b_in"])
    for l in range(params["w_h"].shape[0]):
        h = act(h @ params["w_h"][l] + params["b_h"][l])
    return h @ params["w_out"] + params["b_out"]


if __name__ == "__main__":
    key = jax.random.PRNGKey(0)
    k_x, k_p, k_x2, k_p2 = jax.random.split(key, 4)

    # Config 1: tiny MLP regressor, tanh, 2 hidden layers.
    B, n_inp, n_hidd, n_layers, n_out = 2, 4, 32, 2, 1
    x = jax.random.normal(k_x, (B, n_inp), dtype=jnp.float32)
    params = init_params(k_p, n_inp, n_out, n_hidd, n_layers)
    ref = ffw_reg_reference(x, params, act_fun="tanh")

    # f32 MXU operands -> exact check (resident-weight path).
    prep_f32 = prepare_params(params, matmul_dtype=jnp.float32)
    out = jax.block_until_ready(ffw_reg_forward(x, prep_f32, act_fun="tanh"))
    assert out.shape == (B, n_out), out.shape
    assert jnp.allclose(out, ref, atol=1e-5, rtol=1e-5), (out, ref)

    # Forced layer-streaming path (same f32 math -> same exact check).
    out_s = jax.block_until_ready(
        ffw_reg_forward(x, prep_f32, act_fun="tanh", weight_streaming=True))
    assert jnp.allclose(out_s, ref, atol=1e-5, rtol=1e-5), (out_s, ref)

    # Default (bf16 MXU operands) path -> loose tolerance.
    prep_bf16 = prepare_params(params)
    out_b = jax.block_until_ready(ffw_reg_forward(x, prep_bf16, act_fun="tanh"))
    assert jnp.allclose(out_b, ref, atol=5e-2, rtol=5e-2), (out_b, ref)

    # Config 2: no hidden layers, ragged sizes (exercises padding paths), relu.
    B2, n_inp2, n_hidd2, n_out2 = 37, 13, 32, 3
    x2 = jax.random.normal(k_x2, (B2, n_inp2), dtype=jnp.float32)
    params2 = init_params(k_p2, n_inp2, n_out2, n_hidd2, 0)
    ref2 = ffw_reg_reference(x2, params2, act_fun="relu")
    prep2 = prepare_params(params2, matmul_dtype=jnp.float32)
    out2 = jax.block_until_ready(ffw_reg_forward(x2, prep2, act_fun="relu"))
    assert out2.shape == (B2, n_out2), out2.shape
    assert jnp.allclose(out2, ref2, atol=1e-5, rtol=1e-5), (out2, ref2)

    print("KERNEL_OK")
</pallas_src>

<mosaic_0001>
module attributes {stable_mosaic.version = 11 : i64} {
  func.func @_ffw_resident_kernel(%arg0: i32, %arg1: memref<8x8xf32, #tpu.memory_space<vmem>>, %arg2: memref<8x128xf32, #tpu.memory_space<vmem>>, %arg3: memref<1x128xf32, #tpu.memory_space<vmem>>, %arg4: memref<2x128x128xf32, #tpu.memory_space<vmem>>, %arg5: memref<2x1x128xf32, #tpu.memory_space<vmem>>, %arg6: memref<128x128xf32, #tpu.memory_space<vmem>>, %arg7: memref<1x128xf32, #tpu.memory_space<vmem>>, %arg8: memref<8x128xf32, #tpu.memory_space<vmem>>) attributes {dimension_semantics = [#tpu.dimension_semantics<parallel>], iteration_bounds = array<i64: 1>, scalar_prefetch = 0 : i64, scratch_operands = 0 : i64, tpu.core_type = #tpu.core_type<tc>, window_params = [{transform_indices = @transform_0, window_bounds = array<i64: 8, 8>}, {pipeline_mode = #tpu.pipeline_mode<synchronous>, transform_indices = @transform_1, window_bounds = array<i64: 8, 128>}, {pipeline_mode = #tpu.pipeline_mode<synchronous>, transform_indices = @transform_2, window_bounds = array<i64: 1, 128>}, {pipeline_mode = #tpu.pipeline_mode<synchronous>, transform_indices = @transform_3, window_bounds = array<i64: 2, 128, 128>}, {pipeline_mode = #tpu.pipeline_mode<synchronous>, transform_indices = @transform_4, window_bounds = array<i64: 2, 1, 128>}, {pipeline_mode = #tpu.pipeline_mode<synchronous>, transform_indices = @transform_5, window_bounds = array<i64: 128, 128>}, {pipeline_mode = #tpu.pipeline_mode<synchronous>, transform_indices = @transform_6, window_bounds = array<i64: 1, 128>}, {transform_indices = @transform_7, window_bounds = array<i64: 8, 128>}]} {
    %c0 = arith.constant 0 : index
    %c0_0 = arith.constant 0 : index
    %0 = vector.load %arg1[%c0, %c0_0] : memref<8x8xf32, #tpu.memory_space<vmem>>, vector<8x8xf32>
    %c0_1 = arith.constant 0 : index
    %c0_2 = arith.constant 0 : index
    %1 = vector.load %arg2[%c0_1, %c0_2] : memref<8x128xf32, #tpu.memory_space<vmem>>, vector<8x128xf32>
    %cst = arith.constant dense<0.000000e+00> : vector<8x128xf32>
    %2 = tpu.matmul %0, %1, %cst {dimension_numbers = #tpu.dot_dimension_numbers<[1], [0], [0], [1], [0, 0, 1, 1], [], []>} : vector<8x8xf32>, vector<8x128xf32>, vector<8x128xf32> -> vector<8x128xf32>
    %c0_3 = arith.constant 0 : index
    %c0_4 = arith.constant 0 : index
    %3 = vector.load %arg3[%c0_3, %c0_4] : memref<1x128xf32, #tpu.memory_space<vmem>>, vector<1x128xf32>
    %4 = vector.broadcast %3 : vector<1x128xf32> to vector<8x128xf32>
    %5 = arith.addf %2, %4 : vector<8x128xf32>
    %6 = math.tanh %5 : vector<8x128xf32>
    %c0_5 = arith.constant 0 : index
    %c0_6 = arith.constant 0 : index
    %c0_7 = arith.constant 0 : index
    %7 = vector.load %arg4[%c0_5, %c0_6, %c0_7] : memref<2x128x128xf32, #tpu.memory_space<vmem>>, vector<1x128x128xf32>
    %8 = vector.shape_cast %7 : vector<1x128x128xf32> to vector<128x128xf32>
    %cst_8 = arith.constant dense<0.000000e+00> : vector<8x128xf32>
    %9 = tpu.matmul %6, %8, %cst_8 {dimension_numbers = #tpu.dot_dimension_numbers<[1], [0], [0], [1], [0, 0, 1, 1], [], []>} : vector<8x128xf32>, vector<128x128xf32>, vector<8x128xf32> -> vector<8x128xf32>
    %c0_9 = arith.constant 0 : index
    %c0_10 = arith.constant 0 : index
    %c0_11 = arith.constant 0 : index
    %10 = vector.load %arg5[%c0_9, %c0_10, %c0_11] : memref<2x1x128xf32, #tpu.memory_space<vmem>>, vector<1x1x128xf32>
    %11 = vector.shape_cast %10 : vector<1x1x128xf32> to vector<1x128xf32>
    %12 = vector.broadcast %11 : vector<1x128xf32> to vector<8x128xf32>
    %13 = arith.addf %9, %12 : vector<8x128xf32>
    %14 = math.tanh %13 : vector<8x128xf32>
    %c1 = arith.constant 1 : index
    %c0_12 = arith.constant 0 : index
    %c0_13 = arith.constant 0 : index
    %15 = vector.load %arg4[%c1, %c0_12, %c0_13] : memref<2x128x128xf32, #tpu.memory_space<vmem>>, vector<1x128x128xf32>
    %16 = vector.shape_cast %15 : vector<1x128x128xf32> to vector<128x128xf32>
    %cst_14 = arith.constant dense<0.000000e+00> : vector<8x128xf32>
    %17 = tpu.matmul %14, %16, %cst_14 {dimension_numbers = #tpu.dot_dimension_numbers<[1], [0], [0], [1], [0, 0, 1, 1], [], []>} : vector<8x128xf32>, vector<128x128xf32>, vector<8x128xf32> -> vector<8x128xf32>
    %c1_15 = arith.constant 1 : index
    %c0_16 = arith.constant 0 : index
    %c0_17 = arith.constant 0 : index
    %18 = vector.load %arg5[%c1_15, %c0_16, %c0_17] : memref<2x1x128xf32, #tpu.memory_space<vmem>>, vector<1x1x128xf32>
    %19 = vector.shape_cast %18 : vector<1x1x128xf32> to vector<1x128xf32>
    %20 = vector.broadcast %19 : vector<1x128xf32> to vector<8x128xf32>
    %21 = arith.addf %17, %20 : vector<8x128xf32>
    %22 = math.tanh %21 : vector<8x128xf32>
    %c0_18 = arith.constant 0 : index
    %c0_19 = arith.constant 0 : index
    %23 = vector.load %arg6[%c0_18, %c0_19] : memref<128x128xf32, #tpu.memory_space<vmem>>, vector<128x128xf32>
    %cst_20 = arith.constant dense<0.000000e+00> : vector<8x128xf32>
    %24 = tpu.matmul %22, %23, %cst_20 {dimension_numbers = #tpu.dot_dimension_numbers<[1], [0], [0], [1], [0, 0, 1, 1], [], []>} : vector<8x128xf32>, vector<128x128xf32>, vector<8x128xf32> -> vector<8x128xf32>
    %c0_21 = arith.constant 0 : index
    %c0_22 = arith.constant 0 : index
    %25 = vector.load %arg7[%c0_21, %c0_22] : memref<1x128xf32, #tpu.memory_space<vmem>>, vector<1x128xf32>
    %26 = vector.broadcast %25 : vector<1x128xf32> to vector<8x128xf32>
    %27 = arith.addf %24, %26 : vector<8x128xf32>
    %c0_23 = arith.constant 0 : index
    %c0_24 = arith.constant 0 : index
    %28 = vector.load %arg8[%c0_23, %c0_24] : memref<8x128xf32, #tpu.memory_space<vmem>>, vector<8x128xf32>
    tpu.vector_store %arg8[%c0_23, %c0_24], %27 {strides = array<i32>} : memref<8x128xf32, #tpu.memory_space<vmem>>, vector<8x128xf32>,
    return
  }
  func.func @transform_0(%arg0: i32) -> (i32, i32) {
    %c0_i32 = arith.constant 0 : i32
    %c0_i32_0 = arith.constant 0 : i32
    return %arg0, %c0_i32 : i32, i32
  }
  func.func @transform_1(%arg0: i32) -> (i32, i32) {
    %c0_i32 = arith.constant 0 : i32
    %c0_i32_0 = arith.constant 0 : i32
    %c0_i32_1 = arith.constant 0 : i32
    return %c0_i32, %c0_i32_0 : i32, i32
  }
  func.func @transform_2(%arg0: i32) -> (i32, i32) {
    %c0_i32 = arith.constant 0 : i32
    %c0_i32_0 = arith.constant 0 : i32
    %c0_i32_1 = arith.constant 0 : i32
    return %c0_i32, %c0_i32_0 : i32, i32
  }
  func.func @transform_3(%arg0: i32) -> (i32, i32, i32) {
    %c0_i32 = arith.constant 0 : i32
    %c0_i32_0 = arith.constant 0 : i32
    %c0_i32_1 = arith.constant 0 : i32
    %c0_i32_2 = arith.constant 0 : i32
    return %c0_i32, %c0_i32_0, %c0_i32_1 : i32, i32, i32
  }
  func.func @transform_4(%arg0: i32) -> (i32, i32, i32) {
    %c0_i32 = arith.constant 0 : i32
    %c0_i32_0 = arith.constant 0 : i32
    %c0_i32_1 = arith.constant 0 : i32
    %c0_i32_2 = arith.constant 0 : i32
    return %c0_i32, %c0_i32_0, %c0_i32_1 : i32, i32, i32
  }
  func.func @transform_5(%arg0: i32) -> (i32, i32) {
    %c0_i32 = arith.constant 0 : i32
    %c0_i32_0 = arith.constant 0 : i32
    %c0_i32_1 = arith.constant 0 : i32
    return %c0_i32, %c0_i32_0 : i32, i32
  }
  func.func @transform_6(%arg0: i32) -> (i32, i32) {
    %c0_i32 = arith.constant 0 : i32
    %c0_i32_0 = arith.constant 0 : i32
    %c0_i32_1 = arith.constant 0 : i32
    return %c0_i32, %c0_i32_0 : i32, i32
  }
  func.func @transform_7(%arg0: i32) -> (i32, i32) {
    %c0_i32 = arith.constant 0 : i32
    %c0_i32_0 = arith.constant 0 : i32
    return %arg0, %c0_i32 : i32, i32
  }
}

</mosaic_0001>

<bundles_post_ra>
// kernel: tpu_custom_call.1
= control target key start
LH: loop header
LB: loop body
LE: loop exit
PB: predicated region body
PF: predicated region fallthrough
CT: control target
= control target key end

     0   :  { %12 = vsyncpa [#allocation3], 0  ;;  %s993_s0 = inlined_call_operand.hbm [shape: f32[8,8], index: 0, kind: input, shape index: {}]   ;;  %s994_s1 = inlined_call_operand.hbm [shape: f32[8,128], index: 1, kind: input, shape index: {}]   ;;  %s995_s2 = inlined_call_operand.vmem [shape: f32[1,128], index: 2, kind: input, shape index: {}]   ;;  %s996_s3 = inlined_call_operand.hbm [shape: f32[2,128,128], index: 3, kind: input, shape index: {}]   ;;  %s997_s4 = inlined_call_operand.vmem [shape: f32[2,1,128], index: 4, kind: input, shape index: {}]   ;;  %s998_s5 = inlined_call_operand.hbm [shape: f32[128,128], index: 5, kind: input, shape index: {}]   ;;  %s999_s6 = inlined_call_operand.vmem [shape: f32[1,128], index: 6, kind: input, shape index: {}]   ;;  %s1000_s7 = inlined_call_operand.hbm [shape: f32[8,128], index: 7, kind: output, shape index: {}]  }
   0x1   :  { %13 = vsyncpa [#allocation6], 0 }
   0x2   :  { %14 = vsyncpa [#allocation9], 0 }
   0x3   :  { %15 = vsyncpa [#allocation4], 0  ;;  %s838_s24 = smov [#allocation5]   ;;  %s839_s26 = smov [#allocation2]  }
   0x4   :  { %s32_s25 = sshll.u32 %s838_s24, 4  ;;  %s22_s27 = sshll.u32 %s839_s26, 4  ;;  %s33_s25 = int_to_ptr.vmem [resolvable:$true] %s32_s25  ;;  %s23_s27 = int_to_ptr.vmem [resolvable:$true] %s22_s27 }
   0x5   :  { %s720_s30 = scalar_lea.hbm %s994_s1, 128 }
   0x6   :  { %p721_p0 = scmp.ne.s32.totalorder %s994_s1, %s720_s30  ;;  %p724_p1 = scmp.lt.u32.totalorder %s720_s30, %s994_s1 }
   0x8   :  { %p726_p2 = pnand %p724_p1, %p721_p0 }
   0xa   :  { %729 = shalt.err (!%p726_p2)
}
   0xb   :  { %s730_s12 = scalar_lea.vmem %s33_s25, 128  ;;  %p735_p4 = scmp.lt.s32.totalorder %s33_s25, %s33_s25 }
   0xc   :  { %p731_p3 = scmp.ne.s32.totalorder %s33_s25, %s730_s12  ;;  %p736_p5 = scmp.lt.s32.totalorder %s730_s12, %s730_s12 }
   0xe   :  { %p737_p6 = por %p736_p5, %p735_p4 }
  0x10   :  { %p738_p7 = pnand %p737_p6, %p731_p3 }
  0x12   :  { %741 = shalt.err (!%p738_p7)
}
  0x13   :  { %35 = dma.hbm_to_vmem [thread:$0]  %s994_s1, 128, %s33_s25, [#allocation6]  }
  0x14   :  { %s742_s17 = scalar_lea.hbm %s993_s0, 128 }
  0x15   :  { %p743_p8 = scmp.ne.s32.totalorder %s993_s0, %s742_s17  ;;  %p746_p9 = scmp.lt.u32.totalorder %s742_s17, %s993_s0 }
  0x17   :  { %p748_p10 = pnand %p746_p9, %p743_p8 }
  0x19   :  { %751 = shalt.err (!%p748_p10)
}
  0x1a   :  { %s752_s22 = scalar_lea.vmem %s23_s27, 128  ;;  %p757_p12 = scmp.lt.s32.totalorder %s23_s27, %s23_s27 }
  0x1b   :  { %p753_p11 = scmp.ne.s32.totalorder %s23_s27, %s752_s22  ;;  %p758_p13 = scmp.lt.s32.totalorder %s752_s22, %s752_s22 }
  0x1d   :  { %p759_p0 = por %p758_p13, %p757_p12 }
  0x1f   :  { %p760_p1 = pnand %p759_p0, %p753_p11 }
  0x21   :  { %763 = shalt.err (!%p760_p1)
}
  0x22   :  { %25 = dma.hbm_to_vmem [thread:$0]  %s993_s0, 128, %s23_s27, [#allocation3]  }
  0x23   :  { %s840_s24 = smov [#allocation7]   ;;  %s764_s29 = scalar_lea.hbm %s996_s3, 4096 }
  0x24   :  { %s43_s25 = sshll.u32 %s840_s24, 4  ;;  %p765_p2 = scmp.ne.s32.totalorder %s996_s3, %s764_s29  ;;  %s44_s25 = int_to_ptr.vmem [resolvable:$true] %s43_s25 }
  0x25   :  { %p768_p3 = scmp.lt.u32.totalorder %s764_s29, %s996_s3 }
  0x27   :  { %p770_p4 = pnand %p768_p3, %p765_p2 }
  0x29   :  { %773 = shalt.err (!%p770_p4)
}
  0x2a   :  { %s774_s11 = scalar_lea.vmem %s44_s25, 4096  ;;  %p779_p6 = scmp.lt.s32.totalorder %s44_s25, %s44_s25 }
  0x2b   :  { %p775_p5 = scmp.ne.s32.totalorder %s44_s25, %s774_s11  ;;  %p780_p7 = scmp.lt.s32.totalorder %s774_s11, %s774_s11 }
  0x2d   :  { %p781_p8 = por %p780_p7, %p779_p6 }
  0x2f   :  { %p782_p9 = pnand %p781_p8, %p775_p5 }
  0x31   :  { %785 = shalt.err (!%p782_p9)
}
  0x32   :  { %s841_s0 = smov 128   ;;  %s842_s27 = smov 8  }
  0x33   :  { %49 = dma.hbm_to_vmem [thread:$0]  %s996_s3, 4096, %s44_s25, [#allocation6], %s841_s0, %s841_s0, %s842_s27  }
  0x34   :  { %s843_s14 = smov [#allocation8]   ;;  %s786_s18 = scalar_lea.hbm %s998_s5, 2048 }
  0x35   :  { %s57_s15 = sshll.u32 %s843_s14, 4  ;;  %p787_p10 = scmp.ne.s32.totalorder %s998_s5, %s786_s18  ;;  %s58_s15 = int_to_ptr.vmem [resolvable:$true] %s57_s15 }
  0x36   :  { %p790_p11 = scmp.lt.u32.totalorder %s786_s18, %s998_s5 }
  0x38   :  { %p792_p12 = pnand %p790_p11, %p787_p10 }
  0x3a   :  { %795 = shalt.err (!%p792_p12)
}
  0x3b   :  { %s796_s1 = scalar_lea.vmem %s58_s15, 2048  ;;  %p801_p0 = scmp.lt.s32.totalorder %s58_s15, %s58_s15 }
  0x3c   :  { %p797_p13 = scmp.ne.s32.totalorder %s58_s15, %s796_s1  ;;  %p802_p1 = scmp.lt.s32.totalorder %s796_s1, %s796_s1 }
  0x3e   :  { %p803_p2 = por %p802_p1, %p801_p0 }
  0x40   :  { %p804_p3 = pnand %p803_p2, %p797_p13 }
  0x42   :  { %807 = shalt.err (!%p804_p3)
}
  0x43   :  { %63 = dma.hbm_to_vmem [thread:$0]  %s998_s5, 2048, %s58_s15, [#allocation9], %s841_s0, %s841_s0, %s842_s27  }
  0x44   :  { %830 = dma.done.wait [#allocation3], 128  }
  0x45   :  { %831 = vsyncadd [#allocation3], 4294967168 }
  0x46   :  { %832 = dma.done.wait [#allocation6], 4224  }
  0x47   :  { %833 = vsyncadd [#allocation6], 4294963072 }
  0x48   :  { %834 = dma.done.wait [#allocation9], 2048  }
  0x49   :  { %835 = vsyncadd [#allocation9], 4294965248  ;;  %v844_v0 = vmov 0.0   ;;  %vm845_vm0 = vmmov 0   ;;  %v846_v1 = vmov 0.0|0.0   ;;  %vm87_vm1 = vcmask 64512  }
  0x4a   :  { %522 = vmatprep.subr.mxu0 %v844_v0  ;;  %524 = vmatprep.mubr.msk.f32.mxu0 %vm845_vm0, %v844_v0  ;;  %v79_v2 = vld [vmem:[#allocation5] sm:$0xff]  ;;  %v78_v3 = vld [vmem:[#allocation2] sm:$0xff]  ;;  %v162_v4 = vld [vmem:[#allocation7] sm:$0xff]  ;;  %s847_s8 = smov [#allocation10]  }
  0x4b   :  { %632 = vmatprep.subr.bf16.mxu1 %v846_v1  ;;  %559 = vmatprep.mubr.msk.f32.mxu1 %vm845_vm0, %v844_v0  ;;  %v163_v5 = vld [vmem:[#allocation7 + $0x8] sm:$0xff]  ;;  %v164_v6 = vld [vmem:[#allocation7 + $0x10] sm:$0xff]  ;;  %v165_v7 = vld [vmem:[#allocation7 + $0x18] sm:$0xff]  ;;  %s452_s9 = sshll.u32 %s847_s8, 4  ;;  %s453_s9 = int_to_ptr.vmem [resolvable:$true] %s452_s9 }
  0x4c   :  { %523 = vmatpush3.msra.mxu0 %v79_v2  ;;  %v633_v8 = vpack.c.bf16 %v163_v5, %v162_v4  ;;  %v636_v9 = vpack.c.bf16 %v165_v7, %v164_v6  ;;  %v166_v10 = vld [vmem:[#allocation7 + $0x20] sm:$0xff]  ;;  %v167_v11 = vld [vmem:[#allocation7 + $0x28] sm:$0xff]  ;;  %v168_v13 = vld [vmem:[#allocation7 + $0x30] sm:$0xff]  ;;  %s808_s10 = scalar_lea.vmem %s453_s9, 128  ;;  %p813_p5 = scmp.lt.s32.totalorder %s453_s9, %s453_s9 }
  0x4d   :  { %525 = vmatmul.mubr.msk.f32.vlgmr.msra.gmra.mrb[0].mxu0 %vm87_vm1, %v78_v3  ;;  %656 = vmatprep.subr.bf16.mxu0 %v846_v1  ;;  %v639_v12 = vpack.c.bf16 %v167_v11, %v166_v10  ;;  %v169_v14 = vld [vmem:[#allocation7 + $0x38] sm:$0xff]  ;;  %v170_v16 = vld [vmem:[#allocation7 + $0x40] sm:$0xff]  ;;  %v171_v17 = vld [vmem:[#allocation7 + $0x48] sm:$0xff]  ;;  %p809_p4 = scmp.ne.s32.totalorder %s453_s9, %s808_s10  ;;  %p814_p6 = scmp.lt.s32.totalorder %s808_s10, %s808_s10 }
  0x4e   :  { %594 = vmatprep.mubr.msk.f32.mxu0 %vm845_vm0, %v844_v0  ;;  %634 = vmatpush3.bf16.msra.mxu1 %v633_v8  ;;  %v642_v15 = vpack.c.bf16 %v169_v14, %v168_v13  ;;  %v645_v18 = vpack.c.bf16 %v171_v17, %v170_v16  ;;  %v172_v19 = vld [vmem:[#allocation7 + $0x50] sm:$0xff]  ;;  %v173_v20 = vld [vmem:[#allocation7 + $0x58] sm:$0xff]  ;;  %v174_v22 = vld [vmem:[#allocation7 + $0x60] sm:$0xff] }
  0x4f   :  { %635 = vmatprep.subr.bf16.mxu1 %v846_v1  ;;  %v648_v21 = vpack.c.bf16 %v173_v20, %v172_v19  ;;  %v175_v23 = vld [vmem:[#allocation7 + $0x68] sm:$0xff]  ;;  %v176_v25 = vld [vmem:[#allocation7 + $0x70] sm:$0xff]  ;;  %v177_v26 = vld [vmem:[#allocation7 + $0x78] sm:$0xff]  ;;  %p815_p7 = por %p814_p6, %p813_p5 }
  0x50   :  { %v651_v24 = vpack.c.bf16 %v175_v23, %v174_v22  ;;  %v654_v27 = vpack.c.bf16 %v177_v26, %v176_v25  ;;  %v257_v28 = vld [vmem:[#allocation7 + $0x80] sm:$0xff]  ;;  %v258_v29 = vld [vmem:[#allocation7 + $0x88] sm:$0xff]  ;;  %v259_v30 = vld [vmem:[#allocation7 + $0x90] sm:$0xff] }
  0x51   :  { %v657_v31 = vpack.c.bf16 %v258_v29, %v257_v28  ;;  %v260_v32 = vld [vmem:[#allocation7 + $0x98] sm:$0xff]  ;;  %v261_v34 = vld [vmem:[#allocation7 + $0xa0] sm:$0xff]  ;;  %v262_v35 = vld [vmem:[#allocation7 + $0xa8] sm:$0xff]  ;;  %p816_p8 = pnand %p815_p7, %p809_p4 }
  0x52   :  { %637 = vmatpush3.bf16.msra.mxu1 %v636_v9  ;;  %v660_v33 = vpack.c.bf16 %v260_v32, %v259_v30  ;;  %v663_v36 = vpack.c.bf16 %v262_v35, %v261_v34  ;;  %v263_v37 = vld [vmem:[#allocation7 + $0xb0] sm:$0xff]  ;;  %v264_v38 = vld [vmem:[#allocation7 + $0xb8] sm:$0xff]  ;;  %v265_v40 = vld [vmem:[#allocation7 + $0xc0] sm:$0xff] }
  0x53   :  { %638 = vmatprep.subr.bf16.mxu1 %v846_v1  ;;  %658 = vmatpush3.bf16.msra.mxu0 %v657_v31  ;;  %v666_v39 = vpack.c.bf16 %v264_v38, %v263_v37  ;;  %v266_v41 = vld [vmem:[#allocation7 + $0xc8] sm:$0xff]  ;;  %v463_v43 = vld [vmem:[%s995_s2] ss:$0 sm:$0xff]  ;;  %v268_v49 = vld [vmem:[#allocation7 + $0xd8] sm:$0xff] }
  0x54   :  { %659 = vmatprep.subr.bf16.mxu0 %v846_v1  ;;  %v669_v42 = vpack.c.bf16 %v266_v41, %v265_v40  ;;  %v267_v48 = vld [vmem:[#allocation7 + $0xd0] sm:$0xff]  ;;  %v269_v51 = vld [vmem:[#allocation7 + $0xe0] sm:$0xff]  ;;  %v270_v52 = vld [vmem:[#allocation7 + $0xe8] sm:$0xff] }
  0x55   :  { %v672_v50 = vpack.c.bf16 %v268_v49, %v267_v48  ;;  %v675_v53 = vpack.c.bf16 %v270_v52, %v269_v51  ;;  %v271_v54 = vld [vmem:[#allocation7 + $0xf0] sm:$0xff]  ;;  %v272_v55 = vld [vmem:[#allocation7 + $0xf8] sm:$0xff]  ;;  %v352_v57 = vld [vmem:[#allocation8] sm:$0xff] }
  0x56   :  { %640 = vmatpush3.bf16.msra.mxu1 %v639_v12  ;;  %v678_v56 = vpack.c.bf16 %v272_v55, %v271_v54  ;;  %v353_v58 = vld [vmem:[#allocation8 + $0x8] sm:$0xff]  ;;  %v354_v59 = vld [vmem:[#allocation8 + $0x10] sm:$0xff]  ;;  %v355_v61 = vld [vmem:[#allocation8 + $0x18] sm:$0xff] }
  0x57   :  { %641 = vmatprep.subr.bf16.mxu1 %v846_v1  ;;  %661 = vmatpush3.bf16.msra.mxu0 %v660_v33  ;;  %v681_v60 = vpack.c.bf16 %v353_v58, %v352_v57  ;;  %v684_v62 = vpack.c.bf16 %v355_v61, %v354_v59  ;;  %v356_v63 = vld [vmem:[#allocation8 + $0x20] sm:$0xff]  ;;  %v358_v3 = vld [vmem:[#allocation8 + $0x30] sm:$0xff]  ;;  %v359_v4 = vld [vmem:[#allocation8 + $0x38] sm:$0xff] }
  0x58   :  { %662 = vmatprep.subr.bf16.mxu0 %v846_v1  ;;  %v690_v5 = vpack.c.bf16 %v359_v4, %v358_v3  ;;  %v360_v6 = vld [vmem:[#allocation8 + $0x40] sm:$0xff]  ;;  %v361_v7 = vld [vmem:[#allocation8 + $0x48] sm:$0xff]  ;;  %v465_v9 = vld [vmem:[%s997_s4] ss:$0 sm:$0xff] }
  0x59   :  { %v693_v8 = vpack.c.bf16 %v361_v7, %v360_v6  ;;  %v362_v14 = vld [vmem:[#allocation8 + $0x50] sm:$0xff]  ;;  %v364_v17 = vld [vmem:[#allocation8 + $0x60] sm:$0xff] }
  0x5a   :  { %643 = vmatpush3.bf16.msra.mxu1 %v642_v15  ;;  %v363_v15 = vld [vmem:[#allocation8 + $0x58] sm:$0xff]  ;;  %v366_v20 = vld [vmem:[#allocation8 + $0x70] sm:$0xff] }
  0x5b   :  { %644 = vmatprep.subr.bf16.mxu1 %v846_v1  ;;  %664 = vmatpush3.bf16.msra.mxu0 %v663_v36  ;;  %v696_v16 = vpack.c.bf16 %v363_v15, %v362_v14  ;;  %v467_v23 = vld [vmem:[%s997_s4 + $0x1] ss:$0 sm:$0xff]  ;;  %v468_v28 = vld [vmem:[%s999_s6] ss:$0 sm:$0xff] }
  0x5c   :  { %665 = vmatprep.subr.bf16.mxu0 %v846_v1 }
  0x5e   :  { %646 = vmatpush3.bf16.msra.mxu1 %v645_v18  ;;  %v365_v18 = vld [vmem:[#allocation8 + $0x68] sm:$0xff] }
  0x5f   :  { %647 = vmatprep.subr.bf16.mxu1 %v846_v1  ;;  %667 = vmatpush3.bf16.msra.mxu0 %v666_v39  ;;  %v699_v19 = vpack.c.bf16 %v365_v18, %v364_v17 }
  0x60   :  { %668 = vmatprep.subr.bf16.mxu0 %v846_v1 }
  0x62   :  { %649 = vmatpush3.bf16.msra.mxu1 %v648_v21  ;;  %v367_v21 = vld [vmem:[#allocation8 + $0x78] sm:$0xff] }
  0x63   :  { %650 = vmatprep.subr.bf16.mxu1 %v846_v1  ;;  %670 = vmatpush3.bf16.msra.mxu0 %v669_v42  ;;  %v702_v22 = vpack.c.bf16 %v367_v21, %v366_v20 }
  0x64   :  { %671 = vmatprep.subr.bf16.mxu0 %v846_v1 }
  0x66   :  { %652 = vmatpush3.bf16.msra.mxu1 %v651_v24 }
  0x67   :  { %653 = vmatprep.subr.bf16.mxu1 %v846_v1  ;;  %673 = vmatpush3.bf16.msra.mxu0 %v672_v50 }
  0x68   :  { %674 = vmatprep.subr.bf16.mxu0 %v846_v1 }
  0x6a   :  { %655 = vmatpush3.bf16.msra.mxu1 %v654_v27 }
  0x6b   :  { %680 = vmatprep.subr.bf16.mxu1 %v846_v1  ;;  %676 = vmatpush3.bf16.msra.mxu0 %v675_v53 }
  0x6c   :  { %677 = vmatprep.subr.bf16.mxu0 %v846_v1 }
  0x6f   :  { %679 = vmatpush3.bf16.msra.mxu0 %v678_v56 }
 0x120   :  { %v157_v44 = vpop.f32.mrb[0].mxu0 }
 0x121   :  { %v158_v45 = vadd.f32 %v463_v43, %v157_v44  ;;  %v526_v46 = vpop.f32.mrb[1].mxu0 }
 0x123   :  { %714 = vtanh.f32 %v158_v45 }
 0x12d   :  { %v715_v47 = vpop.eup %714 }
 0x12e   :  { %560 = vmatmul.mubr.f32.vlgmr.msra.gmra.mrb[0].mxu1 %v715_v47 }
 0x12f   :  { %629 = vmatprep.mubr.msk.f32.mxu1 %vm845_vm0, %v844_v0  ;;  %682 = vmatpush3.bf16.msra.mxu1 %v681_v60  ;;  %v357_v0 = vld [vmem:[#allocation8 + $0x28] sm:$0xff] }
 0x130   :  { %683 = vmatprep.subr.bf16.mxu1 %v846_v1  ;;  %v687_v2 = vpack.c.bf16 %v357_v0, %v356_v63 }
 0x133   :  { %685 = vmatpush3.bf16.msra.mxu1 %v684_v62 }
 0x134   :  { %686 = vmatprep.subr.bf16.mxu1 %v846_v1 }
 0x137   :  { %688 = vmatpush3.bf16.msra.mxu1 %v687_v2 }
 0x138   :  { %689 = vmatprep.subr.bf16.mxu1 %v846_v1 }
 0x13b   :  { %691 = vmatpush3.bf16.msra.mxu1 %v690_v5 }
 0x13c   :  { %692 = vmatprep.subr.bf16.mxu1 %v846_v1 }
 0x13f   :  { %694 = vmatpush3.bf16.msra.mxu1 %v693_v8 }
 0x140   :  { %695 = vmatprep.subr.bf16.mxu1 %v846_v1 }
 0x143   :  { %697 = vmatpush3.bf16.msra.mxu1 %v696_v16 }
 0x144   :  { %698 = vmatprep.subr.bf16.mxu1 %v846_v1 }
 0x147   :  { %700 = vmatpush3.bf16.msra.mxu1 %v699_v19 }
 0x148   :  { %701 = vmatprep.subr.bf16.mxu1 %v846_v1 }
 0x14b   :  { %703 = vmatpush3.bf16.msra.mxu1 %v702_v22 }
 0x201   :  { %v251_v10 = vpop.f32.mrb[0].mxu1 }
 0x202   :  { %v252_v11 = vadd.f32 %v465_v9, %v251_v10  ;;  %v561_v12 = vpop.f32.mrb[1].mxu1 }
 0x204   :  { %716 = vtanh.f32 %v252_v11 }
 0x20e   :  { %v717_v13 = vpop.eup %716 }
 0x20f   :  { %595 = vmatmul.mubr.f32.vlgmr.msra.gmra.mrb[2].mxu0 %v717_v13 }
 0x2e2   :  { %v347_v24 = vpop.f32.mrb[2].mxu0 }
 0x2e3   :  { %v348_v25 = vadd.f32 %v467_v23, %v347_v24  ;;  %v596_v26 = vpop.f32.mrb[3].mxu0 }
 0x2e5   :  { %718 = vtanh.f32 %v348_v25 }
 0x2ef   :  { %v719_v27 = vpop.eup %718 }
 0x2f0   :  { %630 = vmatmul.mubr.f32.vlgmr.msra.gmra.mrb[2].mxu1 %v719_v27 }
 0x3c3   :  { %v441_v29 = vpop.f32.mrb[2].mxu1 }
 0x3c4   :  { %v442_v30 = vadd.f32 %v468_v28, %v441_v29  ;;  %v631_v1 = vpop.f32.mrb[3].mxu1 }
 0x3c6   :  { %445 = vst [vmem:[#allocation10] sm:$0xff] %v442_v30 }
 0x3c7   :  { %819 = shalt.err (!%p816_p8)
}
 0x3c8   :  { %s820_s0 = scalar_lea.hbm %s1000_s7, 128 }
 0x3c9   :  { %p821_p9 = scmp.ne.s32.totalorder %s1000_s7, %s820_s0  ;;  %p824_p10 = scmp.lt.u32.totalorder %s820_s0, %s1000_s7 }
 0x3cb   :  { %p826_p11 = pnand %p824_p10, %p821_p9 }
 0x3cd   :  { %829 = shalt.err (!%p826_p11)
}
 0x3ce   :  { %455 = dma.vmem_to_hbm [thread:$0]  %s453_s9, 128, %s1000_s7, [#allocation4]  }
 0x3cf   :  { %836 = dma.done.wait [#allocation4], 128  }
 0x3d0   :  { %837 = vsyncadd [#allocation4], 4294967168 }
 0x3d1   :  { %459 = vsyncpa [#allocation3], 1 }
 0x3d2   :  { %460 = vsyncpa [#allocation6], 1 }
 0x3d3   :  { %461 = vsyncpa [#allocation9], 1 }
 0x3d4   :  { %462 = vsyncpa [#allocation4], 1 }

</bundles_post_ra>
